<compile_context>
chip_gen: v5e
topology: v5e:2x2
jax: 0.10.0
libtpu: 0.0.40
codegen_flags: <defaults>
</compile_context>

<pallas_src>
import jax
import jax.numpy as jnp
from jax.experimental import pallas as pl
from jax.experimental.pallas import tpu as pltpu


# ---------------------------------------------------------------------------
# Kernel
# ---------------------------------------------------------------------------
def mlp_kernel(x_ref, w1_ref, b1_ref, w2_ref, b2_ref, w3_ref, b3_ref, o_ref):
    # Layer 1: Linear + ReLU   (bf16 MXU operands, f32 accumulate)
    x = x_ref[...].astype(jnp.bfloat16)
    h = jnp.dot(x, w1_ref[...], preferred_element_type=jnp.float32)
    h = jnp.maximum(h + b1_ref[...], 0.0)
    # Layer 2: Linear + ReLU
    h = jnp.dot(h.astype(jnp.bfloat16), w2_ref[...],
                preferred_element_type=jnp.float32)
    h = jnp.maximum(h + b2_ref[...], 0.0)
    # Output layer: Linear (no activation).  N is padded to 128 lanes so this
    # store is a full-width (lane-dense) vst.
    o = jnp.dot(h.astype(jnp.bfloat16), w3_ref[...],
                preferred_element_type=jnp.float32) + b3_ref[...]
    o_ref[...] = o.astype(o_ref.dtype)


# ---------------------------------------------------------------------------
# Host-side helpers
# ---------------------------------------------------------------------------
def _choose_batch_tile(B, batch_tile, min_steps=2):
    """Largest sublane-aligned batch tile <= batch_tile that still leaves
    >= min_steps grid steps (so v7x's 2 TensorCores both get work under the
    'parallel' dimension semantics).  Tiny batches fall back to tb == B."""
    if B <= 8:
        return max(B, 1)
    tb = min(batch_tile, B)
    if B >= min_steps * 8:
        tb = min(tb, -(-B // min_steps))          # ceil(B / min_steps)
    tb = max(8, (tb // 8) * 8)                    # multiple of 8 sublanes
    return tb


def prepare_params(params, *, lane=128):
    """Zero-pad every layer's output width up to a multiple of 128 lanes and
    cast weights to bf16 (biases stay f32).  Padding is exact: padded hidden
    lanes are ReLU(0) = 0 and padded weight rows/cols are 0, so valid lanes
    are bit-identical to the unpadded math.  Done once on the host (never
    in-kernel reshapes)."""
    padded = []
    prev_out = params[0][0].shape[0]              # in_features (unpadded K)
    for (w, b) in params:
        k, n = w.shape
        n_pad = -(-n // lane) * lane
        wp = jnp.zeros((prev_out, n_pad), jnp.float32).at[:k, :n].set(w)
        bp = jnp.zeros((1, n_pad), jnp.float32).at[:, :n].set(b.reshape(1, -1))
        padded.append((wp.astype(jnp.bfloat16), bp))
        prev_out = n_pad
    return padded


def mouse_predictor_forward(x, padded_params, *, output_size, batch_tile=1024):
    """x: (B, input_size*2) float32.  Returns (B, output_size, 2) float32."""
    (w1, b1), (w2, b2), (w3, b3) = padded_params
    B, in_f = x.shape
    out_pad = w3.shape[1]                         # lane-dense padded width (128)
    out_f = output_size * 2
    assert out_f <= out_pad

    tb = _choose_batch_tile(B, batch_tile)
    n_steps = pl.cdiv(B, tb)
    Bp = n_steps * tb
    if Bp != B:                                   # pad batch so every block is full
        x = jnp.pad(x, ((0, Bp - B), (0, 0)))

    def const_block(arr):
        # Constant index_map -> block never changes across grid steps, so the
        # weights/biases are DMA'd once and stay resident in VMEM.
        return pl.BlockSpec(arr.shape, lambda i: (0, 0))

    out = pl.pallas_call(
        mlp_kernel,
        out_shape=jax.ShapeDtypeStruct((Bp, out_pad), jnp.float32),
        grid=(n_steps,),
        in_specs=[
            pl.BlockSpec((tb, in_f), lambda i: (i, 0)),   # x tile over batch
            const_block(w1), const_block(b1),
            const_block(w2), const_block(b2),
            const_block(w3), const_block(b3),
        ],
        out_specs=pl.BlockSpec((tb, out_pad), lambda i: (i, 0)),
        compiler_params=pltpu.CompilerParams(
            dimension_semantics=("parallel",),
        ),
    )(x, w1, b1, w2, b2, w3, b3)

    # Slice away batch/output padding, then match PyTorch's x.view(-1, output_size, 2).
    return out[:B, :out_f].reshape(-1, output_size, 2)


def init_params(key, input_size, output_size, hidden_layers):
    """Deterministic init mirroring the module's layer shapes.
    Weights stored transposed vs PyTorch: (in_features, out_features);
    biases stored as (1, out_features)."""
    dims = [input_size * 2] + [h for h, _ in hidden_layers] + [output_size * 2]
    params = []
    for i in range(len(dims) - 1):
        key, kw, kb = jax.random.split(key, 3)
        bound = 1.0 / jnp.sqrt(dims[i])
        w = jax.random.uniform(kw, (dims[i], dims[i + 1]), jnp.float32, -bound, bound)
        b = jax.random.uniform(kb, (1, dims[i + 1]), jnp.float32, -bound, bound)
        params.append((w, b))
    return params


if __name__ == "__main__":
    input_size = 8           # module's input_size -> in_features = 16
    output_size = 1          # final layer outputs output_size * 2 = 2
    hidden_layers = [(64, "ReLU"), (32, "ReLU")]
    batch = 16               # small test batch; exercises 2 grid steps

    key = jax.random.PRNGKey(0)
    key, kx = jax.random.split(key)
    x = jax.random.normal(kx, (batch, input_size * 2), jnp.float32)

    params = init_params(key, input_size, output_size, hidden_layers)
    padded_params = prepare_params(params)

    y = mouse_predictor_forward(x, padded_params, output_size=output_size)
    y = jax.block_until_ready(y)
    assert y.shape == (batch, output_size, 2), y.shape

    # Reference with the same bf16 operand / f32 accumulate precision as the kernel.
    (w1, b1), (w2, b2), (w3, b3) = params
    bf = jnp.bfloat16
    h = jnp.maximum(jnp.dot(x.astype(bf), w1.astype(bf),
                            preferred_element_type=jnp.float32) + b1, 0.0)
    h = jnp.maximum(jnp.dot(h.astype(bf), w2.astype(bf),
                            preferred_element_type=jnp.float32) + b2, 0.0)
    ref = (jnp.dot(h.astype(bf), w3.astype(bf),
                   preferred_element_type=jnp.float32) + b3)
    ref = ref.reshape(-1, output_size, 2)
    assert jnp.allclose(y, ref, atol=1e-2, rtol=1e-2)

    print("KERNEL_OK")
</pallas_src>

<mosaic_0001>
module attributes {stable_mosaic.version = 11 : i64} {
  func.func @mlp_kernel(%arg0: i32, %arg1: memref<8x16xf32, #tpu.memory_space<vmem>>, %arg2: memref<16x128xbf16, #tpu.memory_space<vmem>>, %arg3: memref<1x128xf32, #tpu.memory_space<vmem>>, %arg4: memref<128x128xbf16, #tpu.memory_space<vmem>>, %arg5: memref<1x128xf32, #tpu.memory_space<vmem>>, %arg6: memref<128x128xbf16, #tpu.memory_space<vmem>>, %arg7: memref<1x128xf32, #tpu.memory_space<vmem>>, %arg8: memref<8x128xf32, #tpu.memory_space<vmem>>) attributes {dimension_semantics = [#tpu.dimension_semantics<parallel>], iteration_bounds = array<i64: 2>, scalar_prefetch = 0 : i64, scratch_operands = 0 : i64, tpu.core_type = #tpu.core_type<tc>, window_params = [{transform_indices = @transform_0, window_bounds = array<i64: 8, 16>}, {pipeline_mode = #tpu.pipeline_mode<synchronous>, transform_indices = @transform_1, window_bounds = array<i64: 16, 128>}, {pipeline_mode = #tpu.pipeline_mode<synchronous>, transform_indices = @transform_2, window_bounds = array<i64: 1, 128>}, {pipeline_mode = #tpu.pipeline_mode<synchronous>, transform_indices = @transform_3, window_bounds = array<i64: 128, 128>}, {pipeline_mode = #tpu.pipeline_mode<synchronous>, transform_indices = @transform_4, window_bounds = array<i64: 1, 128>}, {pipeline_mode = #tpu.pipeline_mode<synchronous>, transform_indices = @transform_5, window_bounds = array<i64: 128, 128>}, {pipeline_mode = #tpu.pipeline_mode<synchronous>, transform_indices = @transform_6, window_bounds = array<i64: 1, 128>}, {transform_indices = @transform_7, window_bounds = array<i64: 8, 128>}]} {
    %c0 = arith.constant 0 : index
    %c0_0 = arith.constant 0 : index
    %0 = vector.load %arg1[%c0, %c0_0] : memref<8x16xf32, #tpu.memory_space<vmem>>, vector<8x16xf32>
    %1 = arith.truncf %0 : vector<8x16xf32> to vector<8x16xbf16>
    %c0_1 = arith.constant 0 : index
    %c0_2 = arith.constant 0 : index
    %2 = vector.load %arg2[%c0_1, %c0_2] : memref<16x128xbf16, #tpu.memory_space<vmem>>, vector<16x128xbf16>
    %cst = arith.constant dense<0.000000e+00> : vector<8x128xf32>
    %3 = tpu.matmul %1, %2, %cst {dimension_numbers = #tpu.dot_dimension_numbers<[1], [0], [0], [1], [0, 0, 1, 1], [], []>} : vector<8x16xbf16>, vector<16x128xbf16>, vector<8x128xf32> -> vector<8x128xf32>
    %c0_3 = arith.constant 0 : index
    %c0_4 = arith.constant 0 : index
    %4 = vector.load %arg3[%c0_3, %c0_4] : memref<1x128xf32, #tpu.memory_space<vmem>>, vector<1x128xf32>
    %5 = vector.broadcast %4 : vector<1x128xf32> to vector<8x128xf32>
    %6 = arith.addf %3, %5 : vector<8x128xf32>
    %cst_5 = arith.constant 0.000000e+00 : f32
    %7 = vector.broadcast %cst_5 : f32 to vector<8x128xf32>
    %8 = arith.maximumf %6, %7 : vector<8x128xf32>
    %9 = arith.truncf %8 : vector<8x128xf32> to vector<8x128xbf16>
    %c0_6 = arith.constant 0 : index
    %c0_7 = arith.constant 0 : index
    %10 = vector.load %arg4[%c0_6, %c0_7] : memref<128x128xbf16, #tpu.memory_space<vmem>>, vector<128x128xbf16>
    %cst_8 = arith.constant dense<0.000000e+00> : vector<8x128xf32>
    %11 = tpu.matmul %9, %10, %cst_8 {dimension_numbers = #tpu.dot_dimension_numbers<[1], [0], [0], [1], [0, 0, 1, 1], [], []>} : vector<8x128xbf16>, vector<128x128xbf16>, vector<8x128xf32> -> vector<8x128xf32>
    %c0_9 = arith.constant 0 : index
    %c0_10 = arith.constant 0 : index
    %12 = vector.load %arg5[%c0_9, %c0_10] : memref<1x128xf32, #tpu.memory_space<vmem>>, vector<1x128xf32>
    %13 = vector.broadcast %12 : vector<1x128xf32> to vector<8x128xf32>
    %14 = arith.addf %11, %13 : vector<8x128xf32>
    %cst_11 = arith.constant 0.000000e+00 : f32
    %15 = vector.broadcast %cst_11 : f32 to vector<8x128xf32>
    %16 = arith.maximumf %14, %15 : vector<8x128xf32>
    %17 = arith.truncf %16 : vector<8x128xf32> to vector<8x128xbf16>
    %c0_12 = arith.constant 0 : index
    %c0_13 = arith.constant 0 : index
    %18 = vector.load %arg6[%c0_12, %c0_13] : memref<128x128xbf16, #tpu.memory_space<vmem>>, vector<128x128xbf16>
    %cst_14 = arith.constant dense<0.000000e+00> : vector<8x128xf32>
    %19 = tpu.matmul %17, %18, %cst_14 {dimension_numbers = #tpu.dot_dimension_numbers<[1], [0], [0], [1], [0, 0, 1, 1], [], []>} : vector<8x128xbf16>, vector<128x128xbf16>, vector<8x128xf32> -> vector<8x128xf32>
    %c0_15 = arith.constant 0 : index
    %c0_16 = arith.constant 0 : index
    %20 = vector.load %arg7[%c0_15, %c0_16] : memref<1x128xf32, #tpu.memory_space<vmem>>, vector<1x128xf32>
    %21 = vector.broadcast %20 : vector<1x128xf32> to vector<8x128xf32>
    %22 = arith.addf %19, %21 : vector<8x128xf32>
    %c0_17 = arith.constant 0 : index
    %c0_18 = arith.constant 0 : index
    %23 = vector.load %arg8[%c0_17, %c0_18] : memref<8x128xf32, #tpu.memory_space<vmem>>, vector<8x128xf32>
    tpu.vector_store %arg8[%c0_17, %c0_18], %22 {strides = array<i32>} : memref<8x128xf32, #tpu.memory_space<vmem>>, vector<8x128xf32>,
    return
  }
  func.func @transform_0(%arg0: i32) -> (i32, i32) {
    %c0_i32 = arith.constant 0 : i32
    %c0_i32_0 = arith.constant 0 : i32
    return %arg0, %c0_i32 : i32, i32
  }
  func.func @transform_1(%arg0: i32) -> (i32, i32) {
    %c0_i32 = arith.constant 0 : i32
    %c0_i32_0 = arith.constant 0 : i32
    %c0_i32_1 = arith.constant 0 : i32
    return %c0_i32, %c0_i32_0 : i32, i32
  }
  func.func @transform_2(%arg0: i32) -> (i32, i32) {
    %c0_i32 = arith.constant 0 : i32
    %c0_i32_0 = arith.constant 0 : i32
    %c0_i32_1 = arith.constant 0 : i32
    return %c0_i32, %c0_i32_0 : i32, i32
  }
  func.func @transform_3(%arg0: i32) -> (i32, i32) {
    %c0_i32 = arith.constant 0 : i32
    %c0_i32_0 = arith.constant 0 : i32
    %c0_i32_1 = arith.constant 0 : i32
    return %c0_i32, %c0_i32_0 : i32, i32
  }
  func.func @transform_4(%arg0: i32) -> (i32, i32) {
    %c0_i32 = arith.constant 0 : i32
    %c0_i32_0 = arith.constant 0 : i32
    %c0_i32_1 = arith.constant 0 : i32
    return %c0_i32, %c0_i32_0 : i32, i32
  }
  func.func @transform_5(%arg0: i32) -> (i32, i32) {
    %c0_i32 = arith.constant 0 : i32
    %c0_i32_0 = arith.constant 0 : i32
    %c0_i32_1 = arith.constant 0 : i32
    return %c0_i32, %c0_i32_0 : i32, i32
  }
  func.func @transform_6(%arg0: i32) -> (i32, i32) {
    %c0_i32 = arith.constant 0 : i32
    %c0_i32_0 = arith.constant 0 : i32
    %c0_i32_1 = arith.constant 0 : i32
    return %c0_i32, %c0_i32_0 : i32, i32
  }
  func.func @transform_7(%arg0: i32) -> (i32, i32) {
    %c0_i32 = arith.constant 0 : i32
    %c0_i32_0 = arith.constant 0 : i32
    return %arg0, %c0_i32 : i32, i32
  }
}

</mosaic_0001>

<bundles_post_ra>
// kernel: tpu_custom_call.1
= control target key start
LH: loop header
LB: loop body
LE: loop exit
PB: predicated region body
PF: predicated region fallthrough
CT: control target
= control target key end

     0   :  { %s1256_s0 = inlined_call_operand.hbm [shape: f32[16,16], index: 0, kind: input, shape index: {}]   ;;  %s1257_s1 = inlined_call_operand.hbm [shape: bf16[16,128], index: 1, kind: input, shape index: {}]   ;;  %s1258_s2 = inlined_call_operand.vmem [shape: f32[1,128], index: 2, kind: input, shape index: {}]   ;;  %s1259_s3 = inlined_call_operand.hbm [shape: bf16[128,128], index: 3, kind: input, shape index: {}]   ;;  %s1260_s4 = inlined_call_operand.vmem [shape: f32[1,128], index: 4, kind: input, shape index: {}]   ;;  %s1261_s5 = inlined_call_operand.hbm [shape: bf16[128,128], index: 5, kind: input, shape index: {}]   ;;  %s1262_s6 = inlined_call_operand.vmem [shape: f32[1,128], index: 6, kind: input, shape index: {}]   ;;  %s1263_s7 = inlined_call_operand.hbm [shape: f32[16,128], index: 7, kind: output, shape index: {}]  }
   0x1   :  { %1264 = sst [smem:[#allocation15_spill]] %s1257_s1 }
   0x2   :  { %12 = vsyncpa [#allocation3], 0 }
   0x3   :  { %14 = vsyncpa [#allocation3 + $0x1], 0 }
   0x4   :  { %15 = vsyncpa [#allocation6], 0 }
   0x5   :  { %16 = vsyncpa [#allocation9], 0 }
   0x6   :  { %17 = vsyncpa [#allocation4], 0 }
   0x7   :  { %19 = vsyncpa [#allocation4 + $0x1], 0  ;;  %s1087_s24 = smov 0   ;;  %s1089_s25 = smov 0  }
   0x8   :  { %s1091_s26 = smov 0   ;;  %s1093_s27 = smov 0  }
   0x9 LB: > { %s1265_s1 = sld [smem:[#allocation15_spill]]  ;;  %s1111_s8 = sadd.s32 4294967295, %s1040_s27   ;;  %s1040_s27 = sphi %s1093_s27, %s1276_s27   ;;  %s1036_s26 = sphi %s1091_s26, %s1275_s26   ;;  %s1032_s25 = sphi %s1089_s25, %s1274_s25   ;;  %s1028_s24 = sphi %s1087_s24, %s1273_s24  }
   0xa   : > { %p661_p0 = scmp.ge.s32.totalorder %s1040_s27, 1  ;;  %p46_p1 = scmp.eq.s32.totalorder %s1111_s8, 0 }
   0xb   : > { %p208_p2 = scmp.lt.s32.totalorder %s1040_s27, 3  ;;  %s1042_s10 = smov [#allocation5]  }
   0xc   : > { %s221_s11 = sshll.u32 %s1042_s10, 4  ;;  %s236_s14 = sshll.u32 %s1259_s3, 4  ;;  %s222_s11 = int_to_ptr.vmem [resolvable:$true] %s221_s11  ;;  %s237_s14 = int_to_ptr.hbm [resolvable:$true] %s236_s14 }
   0xd   : > { %p1116_p3 = pnand %p661_p0, %p208_p2  ;;  %s253_s18 = sshll.u32 %s1261_s5, 4  ;;  %s254_s18 = int_to_ptr.hbm [resolvable:$true] %s253_s18 }
   0xe   : > { %s1043_s19 = smov [#allocation7]   ;;  %s1044_s21 = smov 64  }
   0xf   : > { %s219_s30 = sshll.u32 %s1265_s1, 4  ;;  %p780_p4 = pneg %p1116_p3  ;;  %s220_s30 = int_to_ptr.hbm [resolvable:$true] %s219_s30 }
  0x10   : > { %s238_s20 = sshll.u32 %s1043_s19, 4  ;;  %s1045_s22 = smov 4   ;;  %s239_s20 = int_to_ptr.vmem [resolvable:$true] %s238_s20 }
  0x11   : > { %p1128_p6 = pnand %p780_p4, %p46_p1  ;;  %s1046_s23 = smov [#allocation8]  }
  0x12   : > { %s255_s28 = sshll.u32 %s1046_s23, 4  ;;  %s660_s29 = sadd.s32 4294967294, %s1040_s27   ;;  %s256_s28 = int_to_ptr.vmem [resolvable:$true] %s255_s28 }
  0x13   : > { %783 = dma.hbm_to_vmem [thread:$0]  (!%p1128_p6), %s220_s30, 128, %s222_s11, [#allocation6], %s1044_s21, %s1044_s21, %s1045_s22  }
  0x14   : > { %786 = dma.hbm_to_vmem [thread:$0]  (!%p1128_p6), %s237_s14, 1024, %s239_s20, [#allocation6], %s1044_s21, %s1044_s21, %s1045_s22  }
  0x15   : > { %789 = dma.hbm_to_vmem [thread:$0]  (!%p1128_p6), %s254_s18, 1024, %s256_s28, [#allocation9], %s1044_s21, %s1044_s21, %s1045_s22  }
  0x16   : > { %s1143_s10 = sadd.s32 1, %s1040_s27   ;;  %s32_s12 = sadd.s32 1, %s1036_s26 }
  0x17   : > { %s29_s30 = ssub.s32 %s1040_s27, %s1143_s10  ;;  %p39_p7 = scmp.ne.s32.totalorder %s1036_s26, %s1032_s25 }
  0x18   : > { %p30_p8 = scmp.eq.s32.totalorder %s29_s30, 0  ;;  %p40_p9 = scmp.eq.s32.totalorder %s1040_s27, 0 }
  0x19   : > { %p45_p10 = scmp.ne.s32.totalorder %s1032_s25, %s1028_s24  ;;  %p195_p11 = scmp.eq.s32.totalorder %s1111_s8, 1 }
  0x1a   : > { %s1155_s11 = scalar_select %p30_p8, %s1036_s26, %s32_s12  }
  0x1b   : > { %p1159_p12 = por %p46_p1, %p45_p10  ;;  %p1163_p13 = por %p195_p11, %p39_p7 }
  0x1c   : > { %p201_p0 = scmp.eq.s32.totalorder %s660_s29, 1  ;;  %p41_p2 = por %p40_p9, %p39_p7 }
  0x1d   : > { %s272_s15 = sand.u32 1, %s1036_s26   ;;  %p801_p6 = scmp.lt.s32.totalorder %s1040_s27, 2 }
  0x1e   : > { %p1168_p4 = por %p201_p0, %p45_p10  ;;  %s666_s17 = sshll.u32 %s272_s15, 3 }
  0x1f   : > { %s667_s18 = sshll.u32 %s1040_s27, 3  ;;  %s276_s23 = scalar_lea.vmem [#allocation2], %s666_s17 }
  0x20   : > { %s280_s21 = scalar_lea.hbm %s1256_s0, %s667_s18  ;;  %s284_s28 = sshll.u32 %s276_s23, 4  ;;  %s285_s28 = int_to_ptr.vmem [resolvable:$true] %s284_s28 }
  0x21   : > { %s282_s22 = sshll.u32 %s280_s21, 4  ;;  %p1177_p8 = pnand %p801_p6, %p41_p2  ;;  %s283_s22 = int_to_ptr.hbm [resolvable:$true] %s282_s22 }
  0x22   : > { %s273_s12 = scalar_lea.sflag [#allocation3], %s272_s15  ;;  %s936_s30 = sshra.s32 %s283_s22, 4  ;;  %s937_s30 = int_to_ptr.hbm [resolvable:$true] %s936_s30 }
  0x23   : > { %s938_s1 = scalar_lea.hbm %s937_s30, 8  ;;  %p940_p9 = pneg %p1177_p8 }
  0x24   : > { %p939_p7 = scmp.ne.s32.totalorder %s937_s30, %s938_s1  ;;  %s943_s17 = scalar_lea.hbm %s1256_s0, 16 }
  0x25   : > { %p944_p0 = scmp.lt.s32.totalorder %s937_s30, %s1256_s0  ;;  %p945_p2 = scmp.lt.s32.totalorder %s943_s17, %s938_s1 }
  0x26   : > { %p941_p10 = pnand %p940_p9, %p939_p7 }
  0x27   : > { %p946_p6 = por %p945_p2, %p944_p0 }
  0x28   : > { %p942_p11 = pneg %p941_p10 }
  0x2a   : > { %p947_p5 = pnand %p946_p6, %p942_p11 }
  0x2c   : > { %950 = shalt.err (!%p947_p5)
}
  0x2d   : > { %793 = dma.hbm_to_vmem [thread:$0]  (!%p1177_p8), %s283_s22, 128, %s285_s28, %s273_s12  }
  0x2e   : > { %293 = sbr.rel (%p1116_p3) target bundleno = 464 (0x1d0), region = 48  ;;  %s1194_s15 = sand.u32 (!%p1116_p3), 1, %s1032_s25  }
  0x2f   : > { %s669_s23 = sshll.u32 (!%p1116_p3), %s1194_s15, 3  ;;  %s296_s18 = scalar_lea.sflag (!%p1116_p3), [#allocation3], %s1194_s15 }
  0x30   : > { %s299_s1 = scalar_lea.vmem (!%p1116_p3), [#allocation2], %s669_s23 }
  0x33   : > { %1011 = dma.done.wait (%p1159_p12), %s296_s18, 128  }
  0x34   : > { %1013 = vsyncadd (%p1159_p12), %s296_s18, 4294967168 }
  0x35   : > { %1015 = dma.done.wait (%p46_p1), [#allocation6], 1152  }
  0x36   : > { %1017 = vsyncadd (%p46_p1), [#allocation6], 4294966144 }
  0x37   : > { %1019 = dma.done.wait (%p46_p1), [#allocation9], 1024  }
  0x38   : > { %1021 = vsyncadd (%p46_p1), [#allocation9], 4294966272  ;;  %v747_v0 = vld [vmem:[#allocation5] sm:$0xff]  ;;  %v347_v1 = vld [vmem:[%s299_s1] sm:$0xff]  ;;  %vm361_vm0 = vcmask 130048   ;;  %s744_s29 = sshll.u32 %s1111_s8, 3 }
  0x39   : > { %v755_v2 = vld [vmem:[#allocation7 + $0x38] sm:$0xff]  ;;  %v348_v3 = vpack.c.bf16 %v347_v1, %v347_v1  ;;  %372 = vmatpush.bf16.msra.mxu0 %v747_v0  ;;  %v754_v4 = vld [vmem:[#allocation7 + $0x30] sm:$0xff]  ;;  %v753_v5 = vld [vmem:[#allocation7 + $0x28] sm:$0xff]  ;;  %s556_s19 = scalar_lea.hbm %s1263_s7, %s744_s29  ;;  %s345_s21 = scalar_lea.vmem [#allocation10], %s669_s23 }
  0x3a   : > { %448 = vmatpush.bf16.msra.mxu1 %v755_v2  ;;  %v752_v6 = vld [vmem:[#allocation7 + $0x20] sm:$0xff]  ;;  %v751_v7 = vld [vmem:[#allocation7 + $0x18] sm:$0xff]  ;;  %v750_v8 = vld [vmem:[#allocation7 + $0x10] sm:$0xff]  ;;  %s558_s18 = sshll.u32 %s345_s21, 4  ;;  %s560_s1 = sshll.u32 %s556_s19, 4  ;;  %s559_s18 = int_to_ptr.vmem [resolvable:$true] %s558_s18  ;;  %s561_s1 = int_to_ptr.hbm [resolvable:$true] %s560_s1 }
  0x3b   : > { %v749_v9 = vld [vmem:[#allocation7 + $0x8] sm:$0xff]  ;;  %v748_v10 = vld [vmem:[#allocation7] sm:$0xff]  ;;  %v763_v11 = vld [vmem:[#allocation8 + $0x38] sm:$0xff]  ;;  %s546_s9 = scalar_lea.sflag [#allocation4], %s1194_s15  ;;  %s980_s8 = sshra.s32 %s561_s1, 4  ;;  %s981_s8 = int_to_ptr.hbm [resolvable:$true] %s980_s8 }
  0x3c   : > { %678 = vmatmul.msk.bf16.vlgmr.msra.gmra.mxu0 %vm361_vm0, %v348_v3  ;;  %531 = vmatpush.bf16.msra.mxu2 %v763_v11  ;;  %v762_v12 = vld [vmem:[#allocation8 + $0x30] sm:$0xff]  ;;  %v761_v13 = vld [vmem:[#allocation8 + $0x28] sm:$0xff]  ;;  %v760_v14 = vld [vmem:[#allocation8 + $0x20] sm:$0xff]  ;;  %s982_s13 = scalar_lea.hbm %s981_s8, 8  ;;  %s986_s29 = scalar_lea.hbm %s1263_s7, 16 }
  0x3d   : > { %v759_v15 = vld [vmem:[#allocation8 + $0x18] sm:$0xff]  ;;  %v758_v16 = vld [vmem:[#allocation8 + $0x10] sm:$0xff]  ;;  %v843_v17 = vld [vmem:[%s1258_s2] ss:$0 sm:$0xff]  ;;  %p983_p1 = scmp.ne.s32.totalorder %s981_s8, %s982_s13  ;;  %p987_p12 = scmp.lt.s32.totalorder %s981_s8, %s1263_s7 }
  0x3e   : > { %449 = vmatpush.bf16.msra.mxu1 %v754_v4  ;;  %v757_v23 = vld [vmem:[#allocation8 + $0x8] sm:$0xff]  ;;  %v756_v24 = vld [vmem:[#allocation8] sm:$0xff]  ;;  %p988_p8 = scmp.lt.s32.totalorder %s986_s29, %s982_s13 }
  0x3f   : > { %v844_v25 = vld [vmem:[%s1260_s4] ss:$0 sm:$0xff]  ;;  %p984_p3 = pnand %p983_p1, %p1163_p13 }
  0x40   : > { %532 = vmatpush.bf16.msra.mxu2 %v762_v12  ;;  %v845_v31 = vld [vmem:[%s1262_s6] ss:$0 sm:$0xff]  ;;  %p989_p7 = por %p988_p8, %p987_p12 }
  0x41   : > { %p985_p5 = pneg %p984_p3 }
  0x42   : > { %450 = vmatpush.bf16.msra.mxu1 %v753_v5 }
  0x43   : > { %p990_p9 = pnand %p989_p7, %p985_p5 }
  0x44   : > { %533 = vmatpush.bf16.msra.mxu2 %v761_v13 }
  0x46   : > { %451 = vmatpush.bf16.msra.mxu1 %v752_v6 }
  0x48   : > { %534 = vmatpush.bf16.msra.mxu2 %v760_v14 }
  0x4a   : > { %452 = vmatpush.bf16.msra.mxu1 %v751_v7 }
  0x4c   : > { %535 = vmatpush.bf16.msra.mxu2 %v759_v15 }
  0x4e   : > { %453 = vmatpush.bf16.msra.mxu1 %v750_v8 }
  0x50   : > { %536 = vmatpush.bf16.msra.mxu2 %v758_v16 }
  0x52   : > { %454 = vmatpush.bf16.msra.mxu1 %v749_v9 }
  0x54   : > { %537 = vmatpush.bf16.msra.mxu2 %v757_v23 }
  0x56   : > { %455 = vmatpush.bf16.msra.mxu1 %v748_v10 }
  0x58   : > { %538 = vmatpush.bf16.msra.mxu2 %v756_v24 }
  0xb9   : > { %v374_v18 = vpop.f32.mrf.mxu0 }
  0xba   : > { %v375_v19 = vadd.f32 %v843_v17, %v374_v18 }
  0xbc   : > { %v378_v20 = vmax.f32 %v375_v19, 0.0 }
  0xbe   : > { %v379_v21 = vpack.c.bf16 %v378_v20, %v378_v20 }
  0xc0   : > { %456 = vmatmul.bf16.vlgmr.msra.gmra.mxu1 %v379_v21 }
  0xc1   : > { %v376_v22 = vpop.f32.mrf.mxu0 }
 0x13d   : > { %v457_v26 = vpop.f32.mrf.mxu1 }
 0x13e   : > { %v458_v27 = vadd.f32 %v844_v25, %v457_v26 }
 0x140   : > { %v461_v28 = vmax.f32 %v458_v27, 0.0 }
 0x142   : > { %v462_v29 = vpack.c.bf16 %v461_v28, %v461_v28 }
 0x144   : > { %539 = vmatmul.bf16.vlgmr.msra.gmra.mxu2 %v462_v29 }
 0x145   : > { %v459_v30 = vpop.f32.mrf.mxu1 }
 0x1c7   : > { %v540_v32 = vpop.f32.mrf.mxu2 }
 0x1c8   : > { %v541_v33 = vadd.f32 %v845_v31, %v540_v32 }
 0x1ca   : > { %544 = vst [vmem:[%s345_s21] sm:$0xff] %v541_v33 }
 0x1cb   : > { %993 = shalt.err (!%p990_p9)
}
 0x1cc   : > { %778 = dma.vmem_to_hbm [thread:$0]  (%p1163_p13), %s559_s18, 128, %s561_s1, %s546_s9  }
 0x1cf   : > { %v542_v34 = vpop.f32.mrf.mxu2 }
 0x1d0 PF: > { %s572_s15 = sand.u32 1, %s1028_s24   ;;  %p1272_p10 = scmp.ge.s32.totalorder %s1040_s27, 2 }
 0x1d1   : > { %s573_s30 = scalar_lea.sflag [#allocation4], %s572_s15 }
 0x1d2   : > { %p795_p11 = pnand %p1272_p10, %p1168_p4 }
 0x1d4   : > { %p796_p0 = pneg %p795_p11 }
 0x1d6   : > { %1023 = dma.done.wait (%p796_p0), %s573_s30, 128  }
 0x1d7   : > { %1025 = vsyncadd (%p796_p0), %s573_s30, 4294967168  ;;  %p22_p2 = scmp.ge.s32.totalorder %s1143_s10, 4   ;;  %s1273_s24 = smov %s1032_s25 }
 0x1d8   : > { %s1274_s25 = smov %s1036_s26  ;;  %s1275_s26 = smov %s1155_s11 }
 0x1d9   : > { %s1276_s27 = smov %s1143_s10  ;;  %24 = sbr.rel (!%p22_p2) target bundleno = 9 (0x9), region = 105 }
 0x1de   :  { %579 = vsyncpa [#allocation3], 1 }
 0x1df   :  { %581 = vsyncpa [#allocation3 + $0x1], 1 }
 0x1e0   :  { %582 = vsyncpa [#allocation6], 1 }
 0x1e1   :  { %583 = vsyncpa [#allocation9], 1 }
 0x1e2   :  { %584 = vsyncpa [#allocation4], 1 }
 0x1e3   :  { %586 = vsyncpa [#allocation4 + $0x1], 1 }

</bundles_post_ra>
